<compile_context>
chip_gen: v7x
topology: tpu7x:2x2x1
jax: 0.10.0
libtpu: 0.0.40
codegen_flags: <defaults>
</compile_context>

<pallas_src>
import functools

import jax
import jax.numpy as jnp
from jax.experimental import pallas as pl
from jax.experimental.pallas import tpu as pltpu


def _context_block_kernel(x_ref, wm_ref, bm_ref, w1_ref, b1_ref,
                          g_ref, beta_ref, w2_ref, b2_ref, o_ref,
                          *, total_b, ln_eps=1e-5):
    # x_ref / o_ref: (batch_tile, C, HW) tile. Weights are whole (tiny) arrays.
    bt = x_ref.shape[0]                                   # static
    C = x_ref.shape[1]

    # Valid batch rows in this (possibly boundary-clipped) tile.
    step = pl.program_id(0)
    valid = jnp.minimum(bt, total_b - step * bt)

    # ---- weights (tiny); hoisted out of the per-batch loops ----
    wm = wm_ref[...].astype(jnp.float32)                  # (C, 1)  channels on sublanes
    bm = bm_ref[0]                                        # scalar conv_mask bias (SMEM)
    w1 = w1_ref[...].astype(jnp.float32)                  # (P, C)
    b1 = b1_ref[...].astype(jnp.float32)                  # (P, 1)
    g = g_ref[...].astype(jnp.float32)                    # (P, 1)
    bb = beta_ref[...].astype(jnp.float32)                # (P, 1)
    w2 = w2_ref[...].astype(jnp.float32)                  # (C, P)
    b2 = b2_ref[...].astype(jnp.float32)                  # (C, 1)

    # Column (lane) index over the batch positions of the (C, bt) context matrix.
    col_ids = jax.lax.broadcasted_iota(jnp.int32, (C, bt), 1)

    # ---- pass 1: attention spatial pooling, one batch element at a time ----
    # conv_mask (1x1, C->1) as VPU multiply + sublane reduce; softmax over spatial;
    # context = multiply + lane reduce. Results deposited into column b of ctx_all
    # with a lane-mask select (pure VPU, no dynamic lane stores).
    def pool_body(b, ctx_acc):
        xb = x_ref[b]                                             # (C, HW) native dtype
        logits = jnp.sum(xb * wm, axis=0, keepdims=True) + bm     # (1, HW) f32
        m = jnp.max(logits, axis=-1, keepdims=True)
        e = jnp.exp(logits - m)
        attn = e / jnp.sum(e, axis=-1, keepdims=True)             # exact division
        ctx = jnp.sum(xb * attn, axis=-1, keepdims=True)          # (C, 1) f32
        return jnp.where(col_ids == b, ctx, ctx_acc)

    ctx_all = jax.lax.fori_loop(0, valid, pool_body,
                                jnp.zeros((C, bt), jnp.float32))  # (C, bt)

    # ---- channel_add_conv batched across the tile: Conv1x1 -> LN -> ReLU -> Conv1x1 ----
    # Exactly two MXU matmuls per grid step; per-column LayerNorm matches
    # torch.nn.LayerNorm([P, 1, 1]) (biased variance, eps=1e-5).
    h = jnp.dot(w1, ctx_all, preferred_element_type=jnp.float32) + b1    # (P, bt)
    mu = jnp.mean(h, axis=0, keepdims=True)                              # (1, bt)
    var = jnp.mean((h - mu) ** 2, axis=0, keepdims=True)
    h = (h - mu) * jax.lax.rsqrt(var + ln_eps)
    h = jnp.maximum(h * g + bb, 0.0)
    term_all = jnp.dot(w2, h, preferred_element_type=jnp.float32) + b2   # (C, bt)

    # ---- pass 2: fusion (channel-wise add, broadcast over spatial lanes) ----
    # Extract column b of term_all with a masked lane reduction (no dynamic lane
    # slicing); the add is done in the model dtype.
    def fuse_body(b, carry):
        t = jnp.sum(jnp.where(col_ids == b, term_all, 0.0),
                    axis=-1, keepdims=True)                              # (C, 1) f32
        o_ref[b] = x_ref[b] + t.astype(o_ref.dtype)
        return carry

    jax.lax.fori_loop(0, valid, fuse_body, 0)


def context_block(x, params, *, batch_tile=None):
    """x: (B, C, H, W). Returns (B, C, H, W)."""
    B, C, H, W = x.shape
    HW = H * W
    P = params["w1"].shape[0]

    x_flat = x.reshape(B, C, HW)                           # metadata-only reshape

    itemsize = jnp.dtype(x.dtype).itemsize
    bytes_per_b = C * HW * itemsize                        # one batch slab in model dtype
    f32_slab = C * HW * 4                                  # one batch slab as f32 temporary

    # ---- per-generation VMEM budget (leave headroom: ~48 MiB v7x, ~96 MiB v5e/v6e) ----
    try:
        info = pltpu.get_tpu_info()
        vmem_cap = int(getattr(info, "vmem_capacity_bytes", 64 << 20))
    except Exception:  # pragma: no cover - conservative fallback
        vmem_cap = 64 << 20
    vmem_budget = min(int(vmem_cap * 3 // 4), 96 << 20)

    # ---- batch-tile sizing: big tiles (amortize step overhead), bounded by VMEM,
    #      but keep enough grid steps for DMA overlap / v7x megacore sharding ----
    if batch_tile is None:
        target_tile_bytes = 8 << 20
        # double-buffered in + out tiles (4x tile) + ~4 per-b f32 temporaries + headroom
        cap_bytes = max(bytes_per_b, (vmem_budget - 4 * f32_slab - (4 << 20)) // 4)
        tile_cap = min(target_tile_bytes, cap_bytes)
        batch_tile = max(1, int(tile_cap // bytes_per_b))
        bt_steps = max(1, B // 8)                           # >=8 grid steps when B allows
        bt_floor = max(1, -(-(1 << 20) // bytes_per_b))     # ...but keep tiles >= ~1 MiB
        batch_tile = min(batch_tile, max(bt_steps, bt_floor))
    batch_tile = int(max(1, min(batch_tile, B)))

    tile_bytes = batch_tile * bytes_per_b
    vmem_limit = int(min(max(4 * tile_bytes + 4 * f32_slab + (4 << 20), 16 << 20),
                         vmem_budget))

    wm_col = params["wm"].reshape(C, 1).astype(jnp.float32)     # channels on sublanes
    bm_s = params["bm"].reshape(1).astype(jnp.float32)          # SMEM scalar

    kernel = functools.partial(_context_block_kernel, total_b=B)
    grid = (pl.cdiv(B, batch_tile),)

    out = pl.pallas_call(
        kernel,
        out_shape=jax.ShapeDtypeStruct((B, C, HW), x.dtype),
        grid_spec=pltpu.PrefetchScalarGridSpec(
            num_scalar_prefetch=0,
            grid=grid,
            in_specs=[
                pl.BlockSpec((batch_tile, C, HW), lambda i: (i, 0, 0)),   # x
                pl.BlockSpec((C, 1), lambda i: (0, 0)),                    # conv_mask weight
                pl.BlockSpec(memory_space=pltpu.MemorySpace.SMEM),         # conv_mask bias
                pl.BlockSpec((P, C), lambda i: (0, 0)),                    # conv1 weight
                pl.BlockSpec((P, 1), lambda i: (0, 0)),                    # conv1 bias
                pl.BlockSpec((P, 1), lambda i: (0, 0)),                    # LayerNorm gamma
                pl.BlockSpec((P, 1), lambda i: (0, 0)),                    # LayerNorm beta
                pl.BlockSpec((C, P), lambda i: (0, 0)),                    # conv2 weight
                pl.BlockSpec((C, 1), lambda i: (0, 0)),                    # conv2 bias
            ],
            out_specs=pl.BlockSpec((batch_tile, C, HW), lambda i: (i, 0, 0)),
        ),
        compiler_params=pltpu.CompilerParams(
            dimension_semantics=("parallel",),
            vmem_limit_bytes=vmem_limit,
        ),
    )(x_flat, wm_col, bm_s, params["w1"], params["b1"],
      params["ln_g"], params["ln_b"], params["w2"], params["b2"])

    return out.reshape(B, C, H, W)


def _reference(x, params):
    """Plain-JAX reference of the same forward pass, for validation."""
    B, C, H, W = x.shape
    HW = H * W
    xf = x.reshape(B, C, HW)
    logits = jnp.einsum("oc,bcs->bos", params["wm"], xf) + params["bm"][0, 0]  # (B,1,HW)
    attn = jax.nn.softmax(logits, axis=-1)                                      # (B,1,HW)
    ctx = jnp.einsum("bcs,bos->bc", xf, attn)[:, :, None]                       # (B,C,1)
    h = jnp.einsum("pc,bcv->bpv", params["w1"], ctx) + params["b1"][None]       # (B,P,1)
    mu = jnp.mean(h, axis=(1, 2), keepdims=True)
    var = jnp.mean((h - mu) ** 2, axis=(1, 2), keepdims=True)
    h = (h - mu) * jax.lax.rsqrt(var + 1e-5)
    h = h * params["ln_g"][None] + params["ln_b"][None]
    h = jnp.maximum(h, 0.0)
    term = jnp.einsum("cp,bpv->bcv", params["w2"], h) + params["b2"][None]      # (B,C,1)
    return (xf + term).reshape(B, C, H, W)


def _make_params(C, P, keys):
    """Deterministic synthetic parameters (1x1 convs stored as plain matrices)."""
    return {
        "wm":  0.1 * jax.random.normal(keys[0], (1, C), dtype=jnp.float32),   # conv_mask (1,C,1,1)
        "bm":  0.1 * jax.random.normal(keys[1], (1, 1), dtype=jnp.float32),
        "w1":  0.1 * jax.random.normal(keys[2], (P, C), dtype=jnp.float32),   # conv C->P
        "b1":  0.1 * jax.random.normal(keys[3], (P, 1), dtype=jnp.float32),
        "ln_g": jnp.ones((P, 1), dtype=jnp.float32),                          # LayerNorm([P,1,1])
        "ln_b": jnp.zeros((P, 1), dtype=jnp.float32),
        "w2":  0.1 * jax.random.normal(keys[4], (C, P), dtype=jnp.float32),   # conv P->C
        "b2":  0.1 * jax.random.normal(keys[5], (C, 1), dtype=jnp.float32),
    }


if __name__ == "__main__":
    key = jax.random.PRNGKey(0)
    ks = jax.random.split(key, 16)

    # Case 1: aligned spatial dim (HW=256), auto batch tile.
    B, C, H, W = 2, 4, 16, 16
    P = int(C * 0.5)
    x = jax.random.normal(ks[0], (B, C, H, W), dtype=jnp.float32)
    params = _make_params(C, P, ks[1:7])
    out = jax.block_until_ready(context_block(x, params))
    ref = _reference(x, params)
    assert out.shape == (B, C, H, W)
    assert jnp.allclose(out, ref, atol=1e-3, rtol=1e-3), "case 1 mismatch vs JAX reference"

    # Case 2: HW % 128 != 0, C % 8 != 0, and B % batch_tile != 0 (boundary-clipped block).
    B2, C2, H2, W2 = 3, 5, 7, 9
    P2 = max(1, int(C2 * 0.5))
    x2 = jax.random.normal(ks[8], (B2, C2, H2, W2), dtype=jnp.float32)
    params2 = _make_params(C2, P2, ks[9:15])
    out2 = jax.block_until_ready(context_block(x2, params2, batch_tile=2))
    ref2 = _reference(x2, params2)
    assert out2.shape == (B2, C2, H2, W2)
    assert jnp.allclose(out2, ref2, atol=1e-3, rtol=1e-3), "case 2 mismatch vs JAX reference"

    print("KERNEL_OK")
</pallas_src>

<mosaic_0001>
module attributes {stable_mosaic.version = 11 : i64} {
  func.func @_context_block_kernel(%arg0: i32, %arg1: memref<2x4x256xf32, #tpu.memory_space<vmem>>, %arg2: memref<4x1xf32, #tpu.memory_space<vmem>>, %arg3: memref<1xf32, #tpu.memory_space<smem>>, %arg4: memref<2x4xf32, #tpu.memory_space<vmem>>, %arg5: memref<2x1xf32, #tpu.memory_space<vmem>>, %arg6: memref<2x1xf32, #tpu.memory_space<vmem>>, %arg7: memref<2x1xf32, #tpu.memory_space<vmem>>, %arg8: memref<4x2xf32, #tpu.memory_space<vmem>>, %arg9: memref<4x1xf32, #tpu.memory_space<vmem>>, %arg10: memref<2x4x256xf32, #tpu.memory_space<vmem>>) attributes {dimension_semantics = [#tpu.dimension_semantics<parallel>], iteration_bounds = array<i64: 1>, scalar_prefetch = 0 : i64, scratch_operands = 0 : i64, tpu.core_type = #tpu.core_type<tc>, window_params = [{transform_indices = @transform_0, window_bounds = array<i64: 2, 4, 256>}, {pipeline_mode = #tpu.pipeline_mode<synchronous>, transform_indices = @transform_1, window_bounds = array<i64: 4, 1>}, {transform_indices = @transform_2, window_bounds = array<i64: 1>}, {pipeline_mode = #tpu.pipeline_mode<synchronous>, transform_indices = @transform_3, window_bounds = array<i64: 2, 4>}, {pipeline_mode = #tpu.pipeline_mode<synchronous>, transform_indices = @transform_4, window_bounds = array<i64: 2, 1>}, {pipeline_mode = #tpu.pipeline_mode<synchronous>, transform_indices = @transform_5, window_bounds = array<i64: 2, 1>}, {pipeline_mode = #tpu.pipeline_mode<synchronous>, transform_indices = @transform_6, window_bounds = array<i64: 2, 1>}, {pipeline_mode = #tpu.pipeline_mode<synchronous>, transform_indices = @transform_7, window_bounds = array<i64: 4, 2>}, {pipeline_mode = #tpu.pipeline_mode<synchronous>, transform_indices = @transform_8, window_bounds = array<i64: 4, 1>}, {transform_indices = @transform_9, window_bounds = array<i64: 2, 4, 256>}]} {
    %c2_i32 = arith.constant 2 : i32
    %0 = arith.muli %arg0, %c2_i32 : i32
    %c2_i32_0 = arith.constant 2 : i32
    %1 = arith.subi %c2_i32_0, %0 : i32
    %c2_i32_1 = arith.constant 2 : i32
    %2 = arith.minsi %c2_i32_1, %1 : i32
    %c0 = arith.constant 0 : index
    %c0_2 = arith.constant 0 : index
    %3 = vector.load %arg2[%c0, %c0_2] : memref<4x1xf32, #tpu.memory_space<vmem>>, vector<4x1xf32>
    %c0_3 = arith.constant 0 : index
    %4 = memref.load %arg3[%c0_3] : memref<1xf32, #tpu.memory_space<smem>>
    %c0_4 = arith.constant 0 : index
    %c0_5 = arith.constant 0 : index
    %5 = vector.load %arg4[%c0_4, %c0_5] : memref<2x4xf32, #tpu.memory_space<vmem>>, vector<2x4xf32>
    %c0_6 = arith.constant 0 : index
    %c0_7 = arith.constant 0 : index
    %6 = vector.load %arg5[%c0_6, %c0_7] : memref<2x1xf32, #tpu.memory_space<vmem>>, vector<2x1xf32>
    %c0_8 = arith.constant 0 : index
    %c0_9 = arith.constant 0 : index
    %7 = vector.load %arg6[%c0_8, %c0_9] : memref<2x1xf32, #tpu.memory_space<vmem>>, vector<2x1xf32>
    %c0_10 = arith.constant 0 : index
    %c0_11 = arith.constant 0 : index
    %8 = vector.load %arg7[%c0_10, %c0_11] : memref<2x1xf32, #tpu.memory_space<vmem>>, vector<2x1xf32>
    %c0_12 = arith.constant 0 : index
    %c0_13 = arith.constant 0 : index
    %9 = vector.load %arg8[%c0_12, %c0_13] : memref<4x2xf32, #tpu.memory_space<vmem>>, vector<4x2xf32>
    %c0_14 = arith.constant 0 : index
    %c0_15 = arith.constant 0 : index
    %10 = vector.load %arg9[%c0_14, %c0_15] : memref<4x1xf32, #tpu.memory_space<vmem>>, vector<4x1xf32>
    %11 = tpu.iota {dimensions = array<i32: 1>} : vector<4x2xi32>
    %cst = arith.constant 0.000000e+00 : f32
    %12 = vector.broadcast %cst : f32 to vector<4x2xf32>
    %c0_i32 = arith.constant 0 : i32
    %13 = arith.subi %2, %c0_i32 : i32
    %14 = arith.addi %c0_i32, %13 : i32
    %c1_i32 = arith.constant 1 : i32
    %15 = scf.for %arg11 = %c0_i32 to %14 step %c1_i32 iter_args(%arg12 = %12) -> (vector<4x2xf32>)  : i32 {
      %48 = arith.index_cast %arg11 : i32 to index
      %c0_27 = arith.constant 0 : index
      %c0_28 = arith.constant 0 : index
      %49 = vector.load %arg1[%48, %c0_27, %c0_28] : memref<2x4x256xf32, #tpu.memory_space<vmem>>, vector<1x4x256xf32>
      %50 = vector.shape_cast %49 : vector<1x4x256xf32> to vector<4x256xf32>
      %51 = vector.broadcast %3 : vector<4x1xf32> to vector<4x256xf32>
      %52 = arith.mulf %50, %51 : vector<4x256xf32>
      %cst_29 = arith.constant dense<0.000000e+00> : vector<256xf32>
      %53 = vector.multi_reduction <add>, %52, %cst_29 [0] : vector<4x256xf32> to vector<256xf32>
      %54 = vector.shape_cast %53 : vector<256xf32> to vector<1x256xf32>
      %55 = vector.broadcast %4 : f32 to vector<1x256xf32>
      %56 = arith.addf %54, %55 : vector<1x256xf32>
      %cst_30 = arith.constant dense<0xFF800000> : vector<1xf32>
      %57 = vector.multi_reduction <maximumf>, %56, %cst_30 [1] : vector<1x256xf32> to vector<1xf32>
      %58 = vector.shape_cast %57 : vector<1xf32> to vector<1x1xf32>
      %59 = vector.broadcast %58 : vector<1x1xf32> to vector<1x256xf32>
      %60 = arith.subf %56, %59 : vector<1x256xf32>
      %61 = math.exp %60 : vector<1x256xf32>
      %cst_31 = arith.constant dense<0.000000e+00> : vector<1xf32>
      %62 = vector.multi_reduction <add>, %61, %cst_31 [1] : vector<1x256xf32> to vector<1xf32>
      %63 = vector.shape_cast %62 : vector<1xf32> to vector<1x1xf32>
      %64 = vector.broadcast %63 : vector<1x1xf32> to vector<1x256xf32>
      %65 = arith.divf %61, %64 : vector<1x256xf32>
      %66 = vector.broadcast %65 : vector<1x256xf32> to vector<4x256xf32>
      %67 = arith.mulf %50, %66 : vector<4x256xf32>
      %cst_32 = arith.constant dense<0.000000e+00> : vector<4xf32>
      %68 = vector.multi_reduction <add>, %67, %cst_32 [1] : vector<4x256xf32> to vector<4xf32>
      %69 = vector.shape_cast %68 : vector<4xf32> to vector<4x1xf32>
      %70 = vector.broadcast %arg11 : i32 to vector<4x2xi32>
      %71 = arith.cmpi eq, %11, %70 : vector<4x2xi32>
      %72 = vector.shape_cast %69 : vector<4x1xf32> to vector<4x1xf32>
      %73 = vector.broadcast %72 : vector<4x1xf32> to vector<4x2xf32>
      %74 = arith.select %71, %73, %arg12 : vector<4x2xi1>, vector<4x2xf32>
      scf.yield %74 : vector<4x2xf32>
    }
    %cst_16 = arith.constant dense<0.000000e+00> : vector<2x2xf32>
    %16 = tpu.matmul %5, %15, %cst_16 {dimension_numbers = #tpu.dot_dimension_numbers<[1], [0], [0], [1], [0, 0, 1, 1], [], []>} : vector<2x4xf32>, vector<4x2xf32>, vector<2x2xf32> -> vector<2x2xf32>
    %17 = vector.broadcast %6 : vector<2x1xf32> to vector<2x2xf32>
    %18 = arith.addf %16, %17 : vector<2x2xf32>
    %cst_17 = arith.constant dense<0.000000e+00> : vector<2xf32>
    %19 = vector.multi_reduction <add>, %18, %cst_17 [0] : vector<2x2xf32> to vector<2xf32>
    %20 = vector.shape_cast %19 : vector<2xf32> to vector<1x2xf32>
    %cst_18 = arith.constant 2.000000e+00 : f32
    %21 = vector.broadcast %cst_18 : f32 to vector<1x2xf32>
    %22 = arith.divf %20, %21 : vector<1x2xf32>
    %23 = vector.broadcast %22 : vector<1x2xf32> to vector<2x2xf32>
    %24 = arith.subf %18, %23 : vector<2x2xf32>
    %25 = arith.mulf %24, %24 : vector<2x2xf32>
    %cst_19 = arith.constant dense<0.000000e+00> : vector<2xf32>
    %26 = vector.multi_reduction <add>, %25, %cst_19 [0] : vector<2x2xf32> to vector<2xf32>
    %27 = vector.shape_cast %26 : vector<2xf32> to vector<1x2xf32>
    %cst_20 = arith.constant 2.000000e+00 : f32
    %28 = vector.broadcast %cst_20 : f32 to vector<1x2xf32>
    %29 = arith.divf %27, %28 : vector<1x2xf32>
    %30 = vector.broadcast %22 : vector<1x2xf32> to vector<2x2xf32>
    %31 = arith.subf %18, %30 : vector<2x2xf32>
    %cst_21 = arith.constant 9.99999974E-6 : f32
    %32 = vector.broadcast %cst_21 : f32 to vector<1x2xf32>
    %33 = arith.addf %29, %32 : vector<1x2xf32>
    %34 = math.rsqrt %33 : vector<1x2xf32>
    %35 = vector.broadcast %34 : vector<1x2xf32> to vector<2x2xf32>
    %36 = arith.mulf %31, %35 : vector<2x2xf32>
    %37 = vector.broadcast %7 : vector<2x1xf32> to vector<2x2xf32>
    %38 = arith.mulf %36, %37 : vector<2x2xf32>
    %39 = vector.broadcast %8 : vector<2x1xf32> to vector<2x2xf32>
    %40 = arith.addf %38, %39 : vector<2x2xf32>
    %cst_22 = arith.constant 0.000000e+00 : f32
    %41 = vector.broadcast %cst_22 : f32 to vector<2x2xf32>
    %42 = arith.maximumf %40, %41 : vector<2x2xf32>
    %cst_23 = arith.constant dense<0.000000e+00> : vector<4x2xf32>
    %43 = tpu.matmul %9, %42, %cst_23 {dimension_numbers = #tpu.dot_dimension_numbers<[1], [0], [0], [1], [0, 0, 1, 1], [], []>} : vector<4x2xf32>, vector<2x2xf32>, vector<4x2xf32> -> vector<4x2xf32>
    %44 = vector.broadcast %10 : vector<4x1xf32> to vector<4x2xf32>
    %45 = arith.addf %43, %44 : vector<4x2xf32>
    %c0_i32_24 = arith.constant 0 : i32
    %c0_i32_25 = arith.constant 0 : i32
    %46 = arith.subi %2, %c0_i32_25 : i32
    %47 = arith.addi %c0_i32_25, %46 : i32
    %c1_i32_26 = arith.constant 1 : i32
    scf.for %arg11 = %c0_i32_25 to %47 step %c1_i32_26  : i32 {
      %48 = vector.broadcast %arg11 : i32 to vector<4x2xi32>
      %49 = arith.cmpi eq, %11, %48 : vector<4x2xi32>
      %cst_27 = arith.constant 0.000000e+00 : f32
      %50 = vector.broadcast %cst_27 : f32 to vector<4x2xf32>
      %51 = arith.select %49, %45, %50 : vector<4x2xi1>, vector<4x2xf32>
      %cst_28 = arith.constant dense<0.000000e+00> : vector<4xf32>
      %52 = vector.multi_reduction <add>, %51, %cst_28 [1] : vector<4x2xf32> to vector<4xf32>
      %53 = vector.shape_cast %52 : vector<4xf32> to vector<4x1xf32>
      %54 = arith.index_cast %arg11 : i32 to index
      %c0_29 = arith.constant 0 : index
      %c0_30 = arith.constant 0 : index
      %55 = vector.load %arg1[%54, %c0_29, %c0_30] : memref<2x4x256xf32, #tpu.memory_space<vmem>>, vector<1x4x256xf32>
      %56 = vector.shape_cast %55 : vector<1x4x256xf32> to vector<4x256xf32>
      %57 = vector.broadcast %53 : vector<4x1xf32> to vector<4x256xf32>
      %58 = arith.addf %56, %57 : vector<4x256xf32>
      %59 = arith.index_cast %arg11 : i32 to index
      %c0_31 = arith.constant 0 : index
      %c0_32 = arith.constant 0 : index
      %60 = vector.load %arg10[%59, %c0_31, %c0_32] : memref<2x4x256xf32, #tpu.memory_space<vmem>>, vector<1x4x256xf32>
      %61 = vector.shape_cast %60 : vector<1x4x256xf32> to vector<4x256xf32>
      %62 = vector.shape_cast %58 : vector<4x256xf32> to vector<1x4x256xf32>
      tpu.vector_store %arg10[%59, %c0_31, %c0_32], %62 {strides = array<i32>} : memref<2x4x256xf32, #tpu.memory_space<vmem>>, vector<1x4x256xf32>,
    }
    return
  }
  func.func @transform_0(%arg0: i32) -> (i32, i32, i32) {
    %c0_i32 = arith.constant 0 : i32
    %c0_i32_0 = arith.constant 0 : i32
    %c0_i32_1 = arith.constant 0 : i32
    return %arg0, %c0_i32, %c0_i32_0 : i32, i32, i32
  }
  func.func @transform_1(%arg0: i32) -> (i32, i32) {
    %c0_i32 = arith.constant 0 : i32
    %c0_i32_0 = arith.constant 0 : i32
    %c0_i32_1 = arith.constant 0 : i32
    return %c0_i32, %c0_i32_0 : i32, i32
  }
  func.func @transform_2(%arg0: i32) -> i32 {
    %c0_i32 = arith.constant 0 : i32
    %c0_i32_0 = arith.constant 0 : i32
    return %c0_i32 : i32
  }
  func.func @transform_3(%arg0: i32) -> (i32, i32) {
    %c0_i32 = arith.constant 0 : i32
    %c0_i32_0 = arith.constant 0 : i32
    %c0_i32_1 = arith.constant 0 : i32
    return %c0_i32, %c0_i32_0 : i32, i32
  }
  func.func @transform_4(%arg0: i32) -> (i32, i32) {
    %c0_i32 = arith.constant 0 : i32
    %c0_i32_0 = arith.constant 0 : i32
    %c0_i32_1 = arith.constant 0 : i32
    return %c0_i32, %c0_i32_0 : i32, i32
  }
  func.func @transform_5(%arg0: i32) -> (i32, i32) {
    %c0_i32 = arith.constant 0 : i32
    %c0_i32_0 = arith.constant 0 : i32
    %c0_i32_1 = arith.constant 0 : i32
    return %c0_i32, %c0_i32_0 : i32, i32
  }
  func.func @transform_6(%arg0: i32) -> (i32, i32) {
    %c0_i32 = arith.constant 0 : i32
    %c0_i32_0 = arith.constant 0 : i32
    %c0_i32_1 = arith.constant 0 : i32
    return %c0_i32, %c0_i32_0 : i32, i32
  }
  func.func @transform_7(%arg0: i32) -> (i32, i32) {
    %c0_i32 = arith.constant 0 : i32
    %c0_i32_0 = arith.constant 0 : i32
    %c0_i32_1 = arith.constant 0 : i32
    return %c0_i32, %c0_i32_0 : i32, i32
  }
  func.func @transform_8(%arg0: i32) -> (i32, i32) {
    %c0_i32 = arith.constant 0 : i32
    %c0_i32_0 = arith.constant 0 : i32
    %c0_i32_1 = arith.constant 0 : i32
    return %c0_i32, %c0_i32_0 : i32, i32
  }
  func.func @transform_9(%arg0: i32) -> (i32, i32, i32) {
    %c0_i32 = arith.constant 0 : i32
    %c0_i32_0 = arith.constant 0 : i32
    %c0_i32_1 = arith.constant 0 : i32
    return %arg0, %c0_i32, %c0_i32_0 : i32, i32, i32
  }
}

</mosaic_0001>

<bundles_post_ra>
// kernel: tpu_custom_call.1
= control target key start
LH: loop header
LB: loop body
LE: loop exit
PB: predicated region body
PF: predicated region fallthrough
CT: control target
= control target key end

     0   :  { %15 = vsyncpa [#allocation4], 0  ;;  %v46_v2 = vlaneseq  ;;  %v604_v9 = vmov 0.0   ;;  %s662_s0 = inlined_call_operand.vmem [shape: f32[2,4,256], index: 0, kind: input, shape index: {}]   ;;  %s663_s1 = inlined_call_operand.vmem [shape: f32[4,1], index: 1, kind: input, shape index: {}]   ;;  %s664_s2 = inlined_call_operand.<no memory space> [shape: f32[1], index: 2, kind: input, shape index: {}]   ;;  %s665_s3 = inlined_call_operand.vmem [shape: f32[2,4], index: 3, kind: input, shape index: {}]   ;;  %s666_s4 = inlined_call_operand.vmem [shape: f32[2,1], index: 4, kind: input, shape index: {}]   ;;  %s667_s5 = inlined_call_operand.vmem [shape: f32[2,1], index: 5, kind: input, shape index: {}]   ;;  %s668_s6 = inlined_call_operand.vmem [shape: f32[2,1], index: 6, kind: input, shape index: {}]   ;;  %s669_s7 = inlined_call_operand.vmem [shape: f32[4,2], index: 7, kind: input, shape index: {}]   ;;  %s670_s8 = inlined_call_operand.vmem [shape: f32[4,1], index: 8, kind: input, shape index: {}]   ;;  %s671_s9 = inlined_call_operand.hbm [shape: f32[2,4,256], index: 9, kind: output, shape index: {}]  }
   0x1   :  { %v569_v0 = vld [vmem:[%s663_s1] sm:$0xf] }
   0x2   :  { %v574_v1 = vld [vmem:[%s665_s3] sm:$0x3]  ;;  %v602_v8 = vand.u32 127, %v46_v2 }
   0x3   :  { %v579_v3 = vld [vmem:[%s666_s4] sm:$0x3]  ;;  %s606_s4 = smov 0  }
   0x4   :  { %v584_v4 = vld [vmem:[%s667_s5] sm:$0x3] }
   0x5   :  { %v589_v5 = vld [vmem:[%s668_s6] sm:$0x3] }
   0x6   :  { %v594_v6 = vld [vmem:[%s669_s7] sm:$0xf] }
   0x7   :  { %v599_v7 = vld [vmem:[%s670_s8] sm:$0xf] }
   0x8 LB: > { %v508_v10 = vmov 0   ;;  %v509_v11 = vmov 839922192   ;;  %v67_v14 = vshrl.u32 %v46_v2, 7  ;;  %s400_s5 = sshll.u32 %s502_s4, 3  ;;  %vm75_vm0 = vcmask 1043456   ;;  %s502_s4 = sphi %s606_s4, %s51_s4   ;;  %v498_v9 = vphi %v604_v9, %v672_v9  }
   0x9   : > { %449 = vset.pattern.permute.xlu0 %v508_v10  ;;  %v64_v12 = vunpack.c.l.s4 %v509_v11  ;;  %s57_s8 = scalar_lea.vmem %s662_s0, %s400_s5  ;;  %v90_v34 = vstv %s664_s2  ;;  %v121_v57 = vstv %s502_s4  ;;  %s51_s4 = sadd.s32 1, %s502_s4  }
   0xa   : > { %61 = vperm.xlu0 %449, %v569_v0   ;;  %v58_v17 = vld [vmem:[%s57_s8] sm:$0xff]  ;;  %vm122_vm1 = vcmp.eq.s32.totalorder %v602_v8, %v121_v57  ;;  %p50_p0 = scmp.ge.s32.totalorder %s51_s4, 2 }
   0xb   : > { %v65_v13 = vunpack.c.0.s8 %v64_v12  ;;  %vm129_vm2 = vcmask (%p50_p0), 31744   ;;  %v510_v60 = vmov (%p50_p0), 0.0   ;;  %vm511_vm3 = vmmov (%p50_p0), 0   ;;  %s504_s2 = smov (%p50_p0), 0  }
   0xc   :  { %407 = vmatprep.subr.mxu0 (%p50_p0), %v510_v60  ;;  %409 = vmatprep.mubr.msk.f32.mxu0 (%p50_p0), %vm511_vm3, %v510_v60  ;;  %v512_v61 = vmov (%p50_p0), 0   ;;  %vm207_vm4 = vcmask (%p50_p0), 9216   ;;  %vm252_vm5 = vcmask (%p50_p0), 1041408   ;;  %vm248_vm6 = vcmask (%p50_p0), 15360  }
   0xd   : > { %v617_v15 = vsub.s32 %v65_v13, %v67_v14  ;;  %457 = vset.pattern.permute.xlu1 (%p50_p0), %v512_v61  ;;  %412 = vmatprep.subr.mxu1 (%p50_p0), %v510_v60 }
   0xe   :  { %456 = vset.pattern.permute.xlu0 (%p50_p0), %v512_v61  ;;  %414 = vmatprep.mubr.msk.f32.mxu1 (%p50_p0), %vm511_vm3, %v510_v60 }
  0x89   : > { %v62_v16 = vpop.permute.xlu0 %61 }
  0x8a   : > { %v69_v18 = vrot.slane %v62_v16, %v617_v15 }
  0x8c   : > { %v71_v19 = vmul.f32 %v69_v18, %v58_v17 }
  0x8e   : > { %v73_v20 = vcombine.high %v71_v19, %v71_v19  ;;  %v76_v21 = vsel %vm75_vm0, %v71_v19, 0.0 }
  0x8f   : > { %v77_v22 = vrot.slane %v76_v21, 4 }
  0x90   : > { %v83_v23 = vsel %vm75_vm0, %v73_v20, 0.0 }
  0x91   : > { %v78_v24 = vadd.f32 %v77_v22, %v76_v21  ;;  %v84_v25 = vrot.slane %v83_v23, 4 }
  0x93   : > { %v79_v26 = vrot.slane %v78_v24, 2  ;;  %v85_v27 = vadd.f32 %v84_v25, %v83_v23 }
  0x95   : > { %v80_v28 = vadd.f32 %v79_v26, %v78_v24  ;;  %v86_v29 = vrot.slane %v85_v27, 2 }
  0x97   : > { %v81_v30 = vrot.slane %v80_v28, 1  ;;  %v87_v31 = vadd.f32 %v86_v29, %v85_v27 }
  0x99   : > { %v82_v32 = vadd.f32 %v81_v30, %v80_v28  ;;  %v88_v33 = vrot.slane %v87_v31, 1 }
  0x9b   : > { %v89_v35 = vadd.f32 %v88_v33, %v87_v31  ;;  %v91_v36 = vadd.f32 %v90_v34, %v82_v32 }
  0x9d   : > { %v92_v37 = vadd.f32 %v90_v34, %v89_v35 }
  0x9f   : > { %v93_v38 = vmax.f32 %v91_v36, %v92_v37 }
  0xa1   : > { %94 = vmax.xlane.f32.xlu0 %v93_v38 }
  0xb7   :  { %126 = vperm.xlu0 (%p50_p0), %456, %v579_v3  }
  0xbb   :  { %232 = vperm.xlu0 (%p50_p0), %456, %v584_v4  }
 0x12e   : > { %v95_v39 = vpop.xlane.xlu0 %94 }
 0x12f   : > { %v96_v40 = vsub.f32 %v91_v36, %v95_v39  ;;  %v97_v41 = vsub.f32 %v92_v37, %v95_v39 }
 0x131   : > { %v98_v42 = vmul.f32 1.442695, %v96_v40  ;;  %v100_v43 = vmul.f32 1.442695, %v97_v41 }
 0x133   : > { %450 = vpow2.f32 %v98_v42 }
 0x134   : > { %452 = vpow2.f32 %v100_v43 }
 0x136   :  { %v127_v62 = vpop.permute.xlu0 (%p50_p0), %126 }
 0x13a   :  { %v233_v26 = vpop.permute.xlu0 (%p50_p0), %232 }
 0x13d   : > { %v451_v44 = vpop.eup %450 }
 0x13e   : > { %v453_v45 = vpop.eup %452 }
 0x13f   : > { %v102_v46 = vadd.f32 %v453_v45, %v451_v44 }
 0x141   : > { %103 = vadd.xlane.f32.xlu1 %v102_v46 }
 0x1ce   : > { %v104_v47 = vpop.xlane.xlu1 %103 }
 0x1cf   : > { %454 = vrcp.f32 %v104_v47 }
 0x1d9   : > { %v455_v48 = vpop.eup %454 }
 0x1da   : > { %v106_v49 = vmul.f32 %v455_v48, %v451_v44  ;;  %v107_v50 = vmul.f32 %v455_v48, %v453_v45 }
 0x1dc   : > { %v110_v51 = vcombine.low %v106_v49, %v107_v50 }
 0x1de   : > { %v112_v52 = vmul.f32 %v110_v51, %v58_v17 }
 0x1e0   : > { %v114_v53 = vcombine.high %v112_v52, %v112_v52  ;;  %v116_v54 = vsel %vm75_vm0, %v112_v52, 0.0 }
 0x1e2   : > { %v117_v55 = vsel %vm75_vm0, %v114_v53, 0.0 }
 0x1e3   : > { %v118_v56 = vadd.f32 %v117_v55, %v116_v54 }
 0x1e5   : > { %119 = vadd.xlane.f32.xlu1 %v118_v56 }
 0x1f6   :  { %238 = vperm.xlu1 (%p50_p0), %457, %v589_v5  }
 0x1fa   :  { %245 = vperm.xlu1 (%p50_p0), %457, %v599_v7  }
 0x26e   :  { %53 = sbr.rel (!%p50_p0) target bundleno = 8 (0x8), region = 73 }
 0x272   : > { %v120_v58 = vpop.xlane.xlu1 %119 }
 0x273   : > { %v123_v59 = vsel %vm122_vm1, %v120_v58, %v498_v9  }
 0x274   : > { %v672_v9 = vmov %v123_v59  ;;  %408 = vmatpush3.msk.msra.mxu0 (%p50_p0), %vm75_vm0, %v123_v59 }
 0x275   :  { %410 = vmatmul.mubr.msk.f32.vlgmr.msra.gmra.mrb[0].mxu0 %vm129_vm2, %v574_v1 }
 0x276   :  { %v239_v28 = vpop.permute.xlu1 %238 }
 0x27a   :  { %v246_v31 = vpop.permute.xlu1 %245 }
 0x348   :  { %v203_v63 = vpop.f32.mrb[0].mxu0 }
 0x349   :  { %v204_v0 = vadd.f32 %v203_v63, %v127_v62  ;;  %v411_v2 = vpop.f32.mrb[1].mxu0 }
 0x34b   :  { %v208_v9 = vsel %vm207_vm4, %v204_v0, 0.0 }
 0x34c   :  { %v209_v10 = vrot.slane %v208_v9, 4 }
 0x34e   :  { %v210_v11 = vadd.f32 %v209_v10, %v208_v9 }
 0x350   :  { %v211_v1 = vrot.slane %v210_v11, 2 }
 0x352   :  { %v212_v12 = vadd.f32 %v211_v1, %v210_v11 }
 0x354   :  { %v213_v3 = vrot.slane %v212_v12, 1 }
 0x356   :  { %v214_v13 = vadd.f32 %v213_v3, %v212_v12 }
 0x358   :  { %v216_v14 = vmul.f32 0.5, %v214_v13 }
 0x35a   :  { %v217_v16 = vsub.f32 %v204_v0, %v216_v14 }
 0x35c   :  { %v218_v5 = vmul.f32 %v217_v16, %v217_v16 }
 0x35e   :  { %v219_v17 = vsel %vm207_vm4, %v218_v5, 0.0 }
 0x35f   :  { %v220_v18 = vrot.slane %v219_v17, 4 }
 0x361   :  { %v221_v4 = vadd.f32 %v220_v18, %v219_v17 }
 0x363   :  { %v222_v19 = vrot.slane %v221_v4, 2 }
 0x365   :  { %v223_v7 = vadd.f32 %v222_v19, %v221_v4 }
 0x367   :  { %v224_v20 = vrot.slane %v223_v7, 1 }
 0x369   :  { %v225_v21 = vadd.f32 %v224_v20, %v223_v7 }
 0x36b   :  { %v226_v22 = vmul.f32 0.5, %v225_v21 }
 0x36d   :  { %v227_v23 = vadd.f32 1e-05, %v226_v22 }
 0x36f   :  { %458 = vrsqrt.f32 %v227_v23 }
 0x379   :  { %v459_v24 = vpop.eup %458 }
 0x37a   :  { %v229_v25 = vmul.f32 %v459_v24, %v217_v16 }
 0x37c   :  { %v235_v27 = vmul.f32 %v233_v26, %v229_v25 }
 0x37e   :  { %v241_v29 = vadd.f32 %v239_v28, %v235_v27 }
 0x380   :  { %v242_v30 = vmax.f32 %v241_v29, 0.0 }
 0x382   :  { %413 = vmatpush3.msk.msra.mxu1 %vm252_vm5, %v242_v30 }
 0x383   :  { %415 = vmatmul.mubr.msk.f32.vlgmr.msra.gmra.mrb[0].mxu1 %vm248_vm6, %v594_v6 }
 0x456   :  { %v322_v32 = vpop.f32.mrb[0].mxu1 }
 0x457   :  { %v323_v33 = vadd.f32 %v322_v32, %v246_v31  ;;  %v416_v34 = vpop.f32.mrb[1].mxu1 }
 0x458 LB: > { %v332_v35 = vstv %s506_s2  ;;  %vm335_vm7 = vcmask 11264   ;;  %s401_s23 = sshll.u32 %s506_s2, 3  ;;  %s329_s2 = sadd.s32 1, %s506_s2   ;;  %s506_s2 = sphi %s504_s2, %s329_s2  }
 0x459   : > { %vm333_vm8 = vcmp.eq.s32.totalorder %v602_v8, %v332_v35  ;;  %s341_s26 = scalar_lea.vmem %s662_s0, %s401_s23  ;;  %s354_s27 = scalar_lea.vmem [#allocation3], %s401_s23 }
 0x45a   : > { %v334_v36 = vsel %vm333_vm8, %v323_v33, 0.0  ;;  %v342_v38 = vld [vmem:[%s341_s26] sm:$0xff]  ;;  %p328_p1 = scmp.ge.s32.totalorder %s329_s2, 2 }
 0x45b   : > { %v336_v37 = vsel %vm335_vm7, %v334_v36, 0.0  ;;  %s513_s28 = smov (%p328_p1), [#allocation3]  }
 0x45c   : > { %337 = vadd.xlane.f32.xlu0 %v336_v37  ;;  %s361_s29 = sshll.u32 (%p328_p1), %s513_s28, 4  ;;  %s362_s29 = int_to_ptr.vmem [resolvable:$true] %s361_s29 }
 0x45d   :  { %s460_s30 = scalar_lea.vmem (%p328_p1), %s362_s29, 256  ;;  %p465_p3 = scmp.lt.s32.totalorder (%p328_p1), %s362_s29, %s362_s29 }
 0x45e   :  { %p461_p2 = scmp.ne.s32.totalorder (%p328_p1), %s362_s29, %s460_s30  ;;  %p466_p4 = scmp.lt.s32.totalorder (%p328_p1), %s460_s30, %s460_s30 }
 0x460   :  { %p467_p5 = por (%p328_p1), %p466_p4, %p465_p3 }
 0x462   :  { %p468_p6 = pnand (%p328_p1), %p467_p5, %p461_p2 }
 0x4e8   :  { %331 = sbr.rel (!%p328_p1) target bundleno = 1112 (0x458), region = 84 }
 0x4e9   : > { %v338_v6 = vpop.xlane.xlu0 %337 }
 0x4ea   : > { %v350_v39 = vrot.slane %v338_v6, %v617_v15 }
 0x4ec   : > { %v352_v40 = vadd.f32 %v350_v39, %v342_v38 }
 0x4ee   : > { %355 = vst [vmem:[%s354_s27] sm:$0xff] %v352_v40 }
 0x4ef   :  { %471 = shalt.err (!%p468_p6)
}
 0x4f0   :  { %s472_s12 = scalar_lea.hbm %s671_s9, 256 }
 0x4f1   :  { %p473_p7 = scmp.ne.s32.totalorder %s671_s9, %s472_s12  ;;  %p476_p8 = scmp.lt.u32.totalorder %s472_s12, %s671_s9 }
 0x4f3   :  { %p478_p9 = pnand %p476_p8, %p473_p7 }
 0x4f5   :  { %481 = shalt.err (!%p478_p9)
}
 0x4f6   :  { %s514_s0 = smov 128   ;;  %s515_s17 = smov 8  }
 0x4f7   :  { %367 = dma.vmem_to_hbm [thread:$0]  %s362_s29, 256, %s671_s9, [#allocation4], %s514_s0, %s514_s0, %s515_s17  }
 0x4f8   :  { %494 = dma.done.wait [#allocation4], 256  }
 0x4f9   :  { %495 = vsyncadd [#allocation4], 4294967040 }
 0x4fa   :  { %371 = vsyncpa [#allocation4], 1 }

</bundles_post_ra>
